<compile_context>
chip_gen: v5e
topology: v5e:2x2
jax: 0.10.0
libtpu: 0.0.40
codegen_flags: <defaults>
</compile_context>

<pallas_src>
import jax
import jax.numpy as jnp
from jax.experimental import pallas as pl
from jax.experimental.pallas import tpu as pltpu

D_IN, D_H, D_OUT = 224, 56, 8


def _round_up(n, m):
    return ((n + m - 1) // m) * m


def mlp_kernel(x_ref, w1_ref, b1_ref, w2_ref, b2_ref, w3_ref, b3_ref,
               a1_ref, a2_ref, o_ref):
    x = x_ref[...]
    a1 = a1_ref[0]  # PReLU slope, SMEM scalar
    a2 = a2_ref[0]

    # fc1 + PReLU(prelu1): MXU dot with f32 accumulation.
    h = jnp.dot(x, w1_ref[...], preferred_element_type=jnp.float32) + b1_ref[...]
    h = jnp.where(h > 0.0, h, a1 * h)

    # fc2 + PReLU(prelu2).  astype() is a no-op on the f32 path; on the bf16
    # path it keeps activations in the streaming dtype for the MXU.
    h = jnp.dot(h.astype(w2_ref.dtype), w2_ref[...],
                preferred_element_type=jnp.float32) + b2_ref[...]
    h = jnp.where(h > 0.0, h, a2 * h)

    # fc3 (no activation).  Narrow (tb, 8) store: the masked vst is a
    # compute-slot cost that is hidden under the HBM stream (mem-bound kernel).
    o_ref[...] = (jnp.dot(h.astype(w3_ref.dtype), w3_ref[...],
                          preferred_element_type=jnp.float32)
                  + b3_ref[...]).astype(o_ref.dtype)


def _pick_tile(B, tile_b):
    """Batch-tile rows per grid step (multiple of 8 sublanes)."""
    tile_b = max(8, _round_up(tile_b, 8))
    if B <= 512:
        # Small batch: one tile.  Don't split below ~512 rows just to
        # manufacture grid steps (per-step overhead dominates; v5e/v6e have
        # one TensorCore, so there is no second core to feed).
        return min(_round_up(B, 8), tile_b)
    # Tiles >= 512 rows amortize the ~0.35us/step pipeline overhead on every
    # generation.  For large B also target an even step count >= 4 so each
    # v7x TensorCore ('parallel' grid axis, 2 TCs/chip) gets >= 2 steps and
    # can overlap i+1 prefetch / i-1 writeback within a core.
    n_steps = max(4, pl.cdiv(B, tile_b))
    n_steps += n_steps % 2
    return max(512, min(tile_b, _round_up(pl.cdiv(B, n_steps), 8)))


def net_forward(x, params, *, tile_b=2048):
    """x: [B, 224] (float32 or bfloat16) -> [B, 8] float32."""
    w1t, b1, w2t, b2, w3t, b3, a1, a2 = params
    B = x.shape[0]

    tb = _pick_tile(B, tile_b)
    grid = (pl.cdiv(B, tb),)  # partial final block: OOB rows masked by Pallas

    full = lambda i: (0, 0)
    smem_spec = pl.BlockSpec(memory_space=pltpu.MemorySpace.SMEM)

    in_bytes = jnp.dtype(x.dtype).itemsize
    w_bytes = jnp.dtype(w1t.dtype).itemsize
    flops = 2 * B * (D_IN * D_H + D_H * D_H + D_H * D_OUT)
    bytes_accessed = (B * (in_bytes * D_IN + 4 * D_OUT)              # x in, y out
                      + w_bytes * (D_IN * D_H + D_H * D_H + D_H * D_OUT)
                      + 4 * (2 * D_H + D_OUT))                       # biases

    return pl.pallas_call(
        mlp_kernel,
        out_shape=jax.ShapeDtypeStruct((B, D_OUT), jnp.float32),
        grid_spec=pltpu.PrefetchScalarGridSpec(
            num_scalar_prefetch=0,
            grid=grid,
            in_specs=[
                pl.BlockSpec((tb, D_IN), lambda i: (i, 0)),   # x tile (streamed)
                pl.BlockSpec((D_IN, D_H), full),              # W1^T (resident)
                pl.BlockSpec((1, D_H), full),                 # b1
                pl.BlockSpec((D_H, D_H), full),               # W2^T
                pl.BlockSpec((1, D_H), full),                 # b2
                pl.BlockSpec((D_H, D_OUT), full),             # W3^T
                pl.BlockSpec((1, D_OUT), full),               # b3
                smem_spec,                                    # prelu1 alpha
                smem_spec,                                    # prelu2 alpha
            ],
            out_specs=pl.BlockSpec((tb, D_OUT), lambda i: (i, 0)),
        ),
        compiler_params=pltpu.CompilerParams(
            dimension_semantics=("parallel",)),
        cost_estimate=pl.CostEstimate(
            flops=flops, transcendentals=0, bytes_accessed=bytes_accessed),
    )(x, w1t, b1, w2t, b2, w3t, b3, a1, a2)


def init_params(key):
    """Deterministic parameter init mimicking nn.Linear/nn.PReLU shapes."""
    ks = jax.random.split(key, 6)

    def linear(kw, kb, fan_in, fan_out):
        bound = 1.0 / jnp.sqrt(jnp.float32(fan_in))
        w = jax.random.uniform(kw, (fan_out, fan_in), jnp.float32, -bound, bound)
        b = jax.random.uniform(kb, (fan_out,), jnp.float32, -bound, bound)
        # kernel consumes W^T [in, out] and bias as [1, out]
        return w.T, b.reshape(1, fan_out)

    w1t, b1 = linear(ks[0], ks[1], D_IN, D_H)
    w2t, b2 = linear(ks[2], ks[3], D_H, D_H)
    w3t, b3 = linear(ks[4], ks[5], D_H, D_OUT)
    a1 = jnp.full((1,), 0.25, jnp.float32)  # nn.PReLU() default init
    a2 = jnp.full((1,), 0.25, jnp.float32)
    return (w1t, b1, w2t, b2, w3t, b3, a1, a2)


def params_to_bf16(params):
    """Optional bandwidth lever: bf16 weight matrices (biases/alphas stay f32)."""
    w1t, b1, w2t, b2, w3t, b3, a1, a2 = params
    return (w1t.astype(jnp.bfloat16), b1,
            w2t.astype(jnp.bfloat16), b2,
            w3t.astype(jnp.bfloat16), b3, a1, a2)


def net_forward_ref(x, params):
    """Pure-JAX f32 reference of the PyTorch forward."""
    w1t, b1, w2t, b2, w3t, b3, a1, a2 = params
    prelu = lambda v, a: jnp.where(v > 0.0, v, a * v)
    xf = x.astype(jnp.float32)
    h = prelu(xf @ w1t.astype(jnp.float32) + b1, a1[0])
    h = prelu(h @ w2t.astype(jnp.float32) + b2, a2[0])
    return h @ w3t.astype(jnp.float32) + b3


if __name__ == "__main__":
    key = jax.random.PRNGKey(0)
    kx, kp = jax.random.split(key)
    params = init_params(kp)

    # Small batch (single tile, f32 path).
    B = 16
    x = jax.random.normal(kx, (B, D_IN), jnp.float32)
    out = jax.block_until_ready(net_forward(x, params))
    ref = net_forward_ref(x, params)
    assert out.shape == (B, D_OUT)
    assert jnp.allclose(out, ref, atol=1e-4, rtol=1e-4), "mismatch (B=16, f32)"

    # Ragged batch: B not a multiple of 8 exercises the partial-final-block
    # path (no wrapper-side padding; OOB output rows are masked by Pallas).
    B2 = 10
    x2 = jax.random.normal(jax.random.PRNGKey(1), (B2, D_IN), jnp.float32)
    out2 = jax.block_until_ready(net_forward(x2, params))
    ref2 = net_forward_ref(x2, params)
    assert out2.shape == (B2, D_OUT)
    assert jnp.allclose(out2, ref2, atol=1e-4, rtol=1e-4), "mismatch (B=10, f32)"

    # Optional bf16-streaming path (halves dominant HBM traffic; f32 accumulate).
    x_bf16 = x.astype(jnp.bfloat16)
    out_bf = jax.block_until_ready(net_forward(x_bf16, params_to_bf16(params)))
    assert out_bf.shape == (B, D_OUT)
    assert jnp.allclose(out_bf, ref, atol=5e-2, rtol=5e-2), "mismatch (B=16, bf16)"

    print("KERNEL_OK")
</pallas_src>

<mosaic_0001>
module attributes {stable_mosaic.version = 11 : i64} {
  func.func @mlp_kernel(%arg0: i32, %arg1: memref<16x224xf32, #tpu.memory_space<vmem>>, %arg2: memref<224x56xf32, #tpu.memory_space<vmem>>, %arg3: memref<1x56xf32, #tpu.memory_space<vmem>>, %arg4: memref<56x56xf32, #tpu.memory_space<vmem>>, %arg5: memref<1x56xf32, #tpu.memory_space<vmem>>, %arg6: memref<56x8xf32, #tpu.memory_space<vmem>>, %arg7: memref<1x8xf32, #tpu.memory_space<vmem>>, %arg8: memref<1xf32, #tpu.memory_space<smem>>, %arg9: memref<1xf32, #tpu.memory_space<smem>>, %arg10: memref<16x8xf32, #tpu.memory_space<vmem>>) attributes {dimension_semantics = [#tpu.dimension_semantics<parallel>], iteration_bounds = array<i64: 1>, scalar_prefetch = 0 : i64, scratch_operands = 0 : i64, tpu.core_type = #tpu.core_type<tc>, window_params = [{transform_indices = @transform_0, window_bounds = array<i64: 16, 224>}, {pipeline_mode = #tpu.pipeline_mode<synchronous>, transform_indices = @transform_1, window_bounds = array<i64: 224, 56>}, {pipeline_mode = #tpu.pipeline_mode<synchronous>, transform_indices = @transform_2, window_bounds = array<i64: 1, 56>}, {pipeline_mode = #tpu.pipeline_mode<synchronous>, transform_indices = @transform_3, window_bounds = array<i64: 56, 56>}, {pipeline_mode = #tpu.pipeline_mode<synchronous>, transform_indices = @transform_4, window_bounds = array<i64: 1, 56>}, {pipeline_mode = #tpu.pipeline_mode<synchronous>, transform_indices = @transform_5, window_bounds = array<i64: 56, 8>}, {pipeline_mode = #tpu.pipeline_mode<synchronous>, transform_indices = @transform_6, window_bounds = array<i64: 1, 8>}, {transform_indices = @transform_7, window_bounds = array<i64: 1>}, {transform_indices = @transform_8, window_bounds = array<i64: 1>}, {transform_indices = @transform_9, window_bounds = array<i64: 16, 8>}]} {
    %c0 = arith.constant 0 : index
    %c0_0 = arith.constant 0 : index
    %0 = vector.load %arg1[%c0, %c0_0] : memref<16x224xf32, #tpu.memory_space<vmem>>, vector<16x224xf32>
    %c0_1 = arith.constant 0 : index
    %1 = memref.load %arg8[%c0_1] : memref<1xf32, #tpu.memory_space<smem>>
    %c0_2 = arith.constant 0 : index
    %2 = memref.load %arg9[%c0_2] : memref<1xf32, #tpu.memory_space<smem>>
    %c0_3 = arith.constant 0 : index
    %c0_4 = arith.constant 0 : index
    %3 = vector.load %arg2[%c0_3, %c0_4] : memref<224x56xf32, #tpu.memory_space<vmem>>, vector<224x56xf32>
    %cst = arith.constant dense<0.000000e+00> : vector<16x56xf32>
    %4 = tpu.matmul %0, %3, %cst {dimension_numbers = #tpu.dot_dimension_numbers<[1], [0], [0], [1], [0, 0, 1, 1], [], []>} : vector<16x224xf32>, vector<224x56xf32>, vector<16x56xf32> -> vector<16x56xf32>
    %c0_5 = arith.constant 0 : index
    %c0_6 = arith.constant 0 : index
    %5 = vector.load %arg3[%c0_5, %c0_6] : memref<1x56xf32, #tpu.memory_space<vmem>>, vector<1x56xf32>
    %6 = vector.broadcast %5 : vector<1x56xf32> to vector<16x56xf32>
    %7 = arith.addf %4, %6 : vector<16x56xf32>
    %cst_7 = arith.constant 0.000000e+00 : f32
    %8 = vector.broadcast %cst_7 : f32 to vector<16x56xf32>
    %9 = arith.cmpf ogt, %7, %8 : vector<16x56xf32>
    %10 = vector.broadcast %1 : f32 to vector<16x56xf32>
    %11 = arith.mulf %10, %7 : vector<16x56xf32>
    %12 = arith.select %9, %7, %11 : vector<16x56xi1>, vector<16x56xf32>
    %c0_8 = arith.constant 0 : index
    %c0_9 = arith.constant 0 : index
    %13 = vector.load %arg4[%c0_8, %c0_9] : memref<56x56xf32, #tpu.memory_space<vmem>>, vector<56x56xf32>
    %cst_10 = arith.constant dense<0.000000e+00> : vector<16x56xf32>
    %14 = tpu.matmul %12, %13, %cst_10 {dimension_numbers = #tpu.dot_dimension_numbers<[1], [0], [0], [1], [0, 0, 1, 1], [], []>} : vector<16x56xf32>, vector<56x56xf32>, vector<16x56xf32> -> vector<16x56xf32>
    %c0_11 = arith.constant 0 : index
    %c0_12 = arith.constant 0 : index
    %15 = vector.load %arg5[%c0_11, %c0_12] : memref<1x56xf32, #tpu.memory_space<vmem>>, vector<1x56xf32>
    %16 = vector.broadcast %15 : vector<1x56xf32> to vector<16x56xf32>
    %17 = arith.addf %14, %16 : vector<16x56xf32>
    %cst_13 = arith.constant 0.000000e+00 : f32
    %18 = vector.broadcast %cst_13 : f32 to vector<16x56xf32>
    %19 = arith.cmpf ogt, %17, %18 : vector<16x56xf32>
    %20 = vector.broadcast %2 : f32 to vector<16x56xf32>
    %21 = arith.mulf %20, %17 : vector<16x56xf32>
    %22 = arith.select %19, %17, %21 : vector<16x56xi1>, vector<16x56xf32>
    %c0_14 = arith.constant 0 : index
    %c0_15 = arith.constant 0 : index
    %23 = vector.load %arg6[%c0_14, %c0_15] : memref<56x8xf32, #tpu.memory_space<vmem>>, vector<56x8xf32>
    %cst_16 = arith.constant dense<0.000000e+00> : vector<16x8xf32>
    %24 = tpu.matmul %22, %23, %cst_16 {dimension_numbers = #tpu.dot_dimension_numbers<[1], [0], [0], [1], [0, 0, 1, 1], [], []>} : vector<16x56xf32>, vector<56x8xf32>, vector<16x8xf32> -> vector<16x8xf32>
    %c0_17 = arith.constant 0 : index
    %c0_18 = arith.constant 0 : index
    %25 = vector.load %arg7[%c0_17, %c0_18] : memref<1x8xf32, #tpu.memory_space<vmem>>, vector<1x8xf32>
    %26 = vector.broadcast %25 : vector<1x8xf32> to vector<16x8xf32>
    %27 = arith.addf %24, %26 : vector<16x8xf32>
    %c0_19 = arith.constant 0 : index
    %c0_20 = arith.constant 0 : index
    %28 = vector.load %arg10[%c0_19, %c0_20] : memref<16x8xf32, #tpu.memory_space<vmem>>, vector<16x8xf32>
    tpu.vector_store %arg10[%c0_19, %c0_20], %27 {strides = array<i32>} : memref<16x8xf32, #tpu.memory_space<vmem>>, vector<16x8xf32>,
    return
  }
  func.func @transform_0(%arg0: i32) -> (i32, i32) {
    %c0_i32 = arith.constant 0 : i32
    %c0_i32_0 = arith.constant 0 : i32
    return %arg0, %c0_i32 : i32, i32
  }
  func.func @transform_1(%arg0: i32) -> (i32, i32) {
    %c0_i32 = arith.constant 0 : i32
    %c0_i32_0 = arith.constant 0 : i32
    %c0_i32_1 = arith.constant 0 : i32
    return %c0_i32, %c0_i32_0 : i32, i32
  }
  func.func @transform_2(%arg0: i32) -> (i32, i32) {
    %c0_i32 = arith.constant 0 : i32
    %c0_i32_0 = arith.constant 0 : i32
    %c0_i32_1 = arith.constant 0 : i32
    return %c0_i32, %c0_i32_0 : i32, i32
  }
  func.func @transform_3(%arg0: i32) -> (i32, i32) {
    %c0_i32 = arith.constant 0 : i32
    %c0_i32_0 = arith.constant 0 : i32
    %c0_i32_1 = arith.constant 0 : i32
    return %c0_i32, %c0_i32_0 : i32, i32
  }
  func.func @transform_4(%arg0: i32) -> (i32, i32) {
    %c0_i32 = arith.constant 0 : i32
    %c0_i32_0 = arith.constant 0 : i32
    %c0_i32_1 = arith.constant 0 : i32
    return %c0_i32, %c0_i32_0 : i32, i32
  }
  func.func @transform_5(%arg0: i32) -> (i32, i32) {
    %c0_i32 = arith.constant 0 : i32
    %c0_i32_0 = arith.constant 0 : i32
    %c0_i32_1 = arith.constant 0 : i32
    return %c0_i32, %c0_i32_0 : i32, i32
  }
  func.func @transform_6(%arg0: i32) -> (i32, i32) {
    %c0_i32 = arith.constant 0 : i32
    %c0_i32_0 = arith.constant 0 : i32
    %c0_i32_1 = arith.constant 0 : i32
    return %c0_i32, %c0_i32_0 : i32, i32
  }
  func.func @transform_7(%arg0: i32) -> i32 {
    %c0_i32 = arith.constant 0 : i32
    %c0_i32_0 = arith.constant 0 : i32
    return %c0_i32 : i32
  }
  func.func @transform_8(%arg0: i32) -> i32 {
    %c0_i32 = arith.constant 0 : i32
    %c0_i32_0 = arith.constant 0 : i32
    return %c0_i32 : i32
  }
  func.func @transform_9(%arg0: i32) -> (i32, i32) {
    %c0_i32 = arith.constant 0 : i32
    %c0_i32_0 = arith.constant 0 : i32
    return %arg0, %c0_i32 : i32, i32
  }
}

</mosaic_0001>

<bundles_post_ra>
// kernel: tpu_custom_call.1
= control target key start
LH: loop header
LB: loop body
LE: loop exit
PB: predicated region body
PF: predicated region fallthrough
CT: control target
= control target key end

     0   :  { %vm72_vm0 = vcmask 785408   ;;  %vm143_vm2 = vcmask 457728   ;;  %vm220_vm6 = vcmask 64512   ;;  %s449_s1 = inlined_call_operand.vmem [shape: f32[224,56], index: 1, kind: input, shape index: {}]   ;;  %s450_s3 = inlined_call_operand.vmem [shape: f32[56,56], index: 3, kind: input, shape index: {}]   ;;  %s451_s2 = inlined_call_operand.vmem [shape: f32[1,56], index: 2, kind: input, shape index: {}]   ;;  %s452_s0 = inlined_call_operand.vmem [shape: f32[16,224], index: 0, kind: input, shape index: {}]   ;;  %s453_s4 = inlined_call_operand.vmem [shape: f32[1,56], index: 4, kind: input, shape index: {}]   ;;  %s454_s5 = inlined_call_operand.vmem [shape: f32[56,8], index: 5, kind: input, shape index: {}]   ;;  %s455_s7 = inlined_call_operand.<no memory space> [shape: f32[1], index: 7, kind: input, shape index: {}]   ;;  %s456_s6 = inlined_call_operand.vmem [shape: f32[1,8], index: 6, kind: input, shape index: {}]   ;;  %s457_s8 = inlined_call_operand.<no memory space> [shape: f32[1], index: 8, kind: input, shape index: {}]   ;;  %s458_s9 = inlined_call_operand.vmem [shape: f32[16,8], index: 9, kind: output, shape index: {}]  }
   0x1   :  { %v55_v0 = vld [vmem:[%s449_s1 + $0x78] sm:$0xff]  ;;  %v54_v1 = vld [vmem:[%s449_s1 + $0x70] sm:$0xff]  ;;  %v53_v2 = vld [vmem:[%s449_s1 + $0x68] sm:$0xff]  ;;  %v127_v47 = vstv %s455_s7 }
   0x2   :  { %79 = vmatpush.msra.mxu0 %v55_v0  ;;  %v67_v3 = vld [vmem:[%s449_s1 + $0xd8] sm:$0xff]  ;;  %v66_v4 = vld [vmem:[%s449_s1 + $0xd0] sm:$0xff]  ;;  %v52_v5 = vld [vmem:[%s449_s1 + $0x60] sm:$0xff]  ;;  %v175_v62 = vstv %s457_s8 }
   0x3   :  { %106 = vmatpush.msra.mxu1 %v67_v3  ;;  %v65_v6 = vld [vmem:[%s449_s1 + $0xc8] sm:$0xff]  ;;  %v51_v7 = vld [vmem:[%s449_s1 + $0x58] sm:$0xff]  ;;  %v64_v8 = vld [vmem:[%s449_s1 + $0xc0] sm:$0xff] }
   0x4   :  { %80 = vmatpush.msra.mxu0 %v54_v1  ;;  %v50_v9 = vld [vmem:[%s449_s1 + $0x50] sm:$0xff]  ;;  %v63_v10 = vld [vmem:[%s449_s1 + $0xb8] sm:$0xff]  ;;  %v49_v11 = vld [vmem:[%s449_s1 + $0x48] sm:$0xff] }
   0x5   :  { %107 = vmatpush.msra.mxu1 %v66_v4  ;;  %v62_v12 = vld [vmem:[%s449_s1 + $0xb0] sm:$0xff]  ;;  %v137_v14 = vld [vmem:[%s450_s3 + $0x28] sm:$0xff]  ;;  %v48_v15 = vld [vmem:[%s449_s1 + $0x40] sm:$0xff] }
   0x6   :  { %81 = vmatpush.msra.mxu0 %v53_v2  ;;  %v138_v13 = vld [vmem:[%s450_s3 + $0x30] sm:$0xff]  ;;  %v61_v16 = vld [vmem:[%s449_s1 + $0xa8] sm:$0xff]  ;;  %v136_v17 = vld [vmem:[%s450_s3 + $0x20] sm:$0xff] }
   0x7   :  { %108 = vmatpush.msra.mxu1 %v65_v6  ;;  %159 = vmatpush.msra.mxu2 %v138_v13  ;;  %v47_v18 = vld [vmem:[%s449_s1 + $0x38] sm:$0xff]  ;;  %v60_v19 = vld [vmem:[%s449_s1 + $0xa0] sm:$0xff]  ;;  %v46_v20 = vld [vmem:[%s449_s1 + $0x30] sm:$0xff] }
   0x8   :  { %82 = vmatpush.msra.mxu0 %v52_v5  ;;  %v59_v21 = vld [vmem:[%s449_s1 + $0x98] sm:$0xff]  ;;  %v45_v22 = vld [vmem:[%s449_s1 + $0x28] sm:$0xff]  ;;  %v58_v23 = vld [vmem:[%s449_s1 + $0x90] sm:$0xff] }
   0x9   :  { %109 = vmatpush.msra.mxu1 %v64_v8  ;;  %160 = vmatpush.msra.mxu2 %v137_v14  ;;  %v44_v24 = vld [vmem:[%s449_s1 + $0x20] sm:$0xff]  ;;  %v57_v25 = vld [vmem:[%s449_s1 + $0x88] sm:$0xff]  ;;  %v43_v26 = vld [vmem:[%s449_s1 + $0x18] sm:$0xff] }
   0xa   :  { %83 = vmatpush.msra.mxu0 %v51_v7  ;;  %v56_v27 = vld [vmem:[%s449_s1 + $0x80] sm:$0xff]  ;;  %v35_v28 = vld [vmem:[%s452_s0 + $0x8] sm:$0xff]  ;;  %v42_v29 = vld [vmem:[%s449_s1 + $0x10] sm:$0xff] }
   0xb   :  { %110 = vmatpush.msra.mxu1 %v63_v10  ;;  %161 = vmatpush.msra.mxu2 %v136_v17  ;;  %v41_v30 = vld [vmem:[%s449_s1 + $0x8] sm:$0xff]  ;;  %v40_v31 = vld [vmem:[%s449_s1] sm:$0xff]  ;;  %v37_v33 = vld [vmem:[%s452_s0 + $0x18] sm:$0xff] }
   0xc   :  { %84 = vmatpush.msra.mxu0 %v50_v9  ;;  %v34_v32 = vld [vmem:[%s452_s0] sm:$0xff]  ;;  %v36_v34 = vld [vmem:[%s452_s0 + $0x10] sm:$0xff]  ;;  %v135_v35 = vld [vmem:[%s450_s3 + $0x18] sm:$0xff] }
   0xd   :  { %111 = vmatpush.msra.mxu1 %v62_v12  ;;  %162 = vmatpush.msra.mxu2 %v135_v35  ;;  %v134_v36 = vld [vmem:[%s450_s3 + $0x10] sm:$0xff]  ;;  %v133_v37 = vld [vmem:[%s450_s3 + $0x8] sm:$0xff]  ;;  %v132_v38 = vld [vmem:[%s450_s3] sm:$0xff] }
   0xe   :  { %85 = vmatpush.msra.mxu0 %v49_v11  ;;  %v186_v39 = vld [vmem:[%s454_s5 + $0x30] sm:$0xff]  ;;  %v185_v40 = vld [vmem:[%s454_s5 + $0x28] sm:$0xff]  ;;  %v184_v41 = vld [vmem:[%s454_s5 + $0x20] sm:$0xff] }
   0xf   :  { %112 = vmatpush.msra.mxu1 %v61_v16  ;;  %163 = vmatpush.msra.mxu2 %v134_v36  ;;  %v183_v42 = vld [vmem:[%s454_s5 + $0x18] sm:$0xff]  ;;  %v233_v43 = vld [vmem:[%s451_s2] ss:$0 sm:$0xff]  ;;  %v182_v57 = vld [vmem:[%s454_s5 + $0x10] sm:$0xff] }
  0x10   :  { %86 = vmatpush.msra.mxu0 %v48_v15  ;;  %206 = vmatpush.msra.mxu3 %v186_v39  ;;  %v181_v58 = vld [vmem:[%s454_s5 + $0x8] sm:$0xff]  ;;  %v180_v59 = vld [vmem:[%s454_s5] sm:$0xff] }
  0x11   :  { %113 = vmatpush.msra.mxu1 %v60_v19  ;;  %164 = vmatpush.msra.mxu2 %v133_v37  ;;  %v234_v60 = vld [vmem:[%s453_s4] ss:$0 sm:$0xff] }
  0x12   :  { %87 = vmatpush.msra.mxu0 %v47_v18  ;;  %207 = vmatpush.msra.mxu3 %v185_v40  ;;  %v235_v6 = vld [vmem:[%s456_s6] ss:$0 sm:$0xff] }
  0x13   :  { %114 = vmatpush.msra.mxu1 %v59_v21  ;;  %165 = vmatpush.msra.mxu2 %v132_v38 }
  0x14   :  { %88 = vmatpush.msra.mxu0 %v46_v20  ;;  %208 = vmatpush.msra.mxu3 %v184_v41 }
  0x15   :  { %115 = vmatpush.msra.mxu1 %v58_v23 }
  0x16   :  { %89 = vmatpush.msra.mxu0 %v45_v22  ;;  %209 = vmatpush.msra.mxu3 %v183_v42 }
  0x17   :  { %116 = vmatpush.msra.mxu1 %v57_v25 }
  0x18   :  { %90 = vmatpush.msra.mxu0 %v44_v24  ;;  %210 = vmatpush.msra.mxu3 %v182_v57 }
  0x19   :  { %117 = vmatpush.msra.mxu1 %v56_v27 }
  0x1a   :  { %91 = vmatpush.msra.mxu0 %v43_v26  ;;  %227 = vmatmul.msk.f32.vlgmr.msra.gmra.mxu1 %vm72_vm0, %v35_v28 }
  0x1b   :  { %211 = vmatpush.msra.mxu3 %v181_v58 }
  0x1c   :  { %92 = vmatpush.msra.mxu0 %v42_v29 }
  0x1d   :  { %212 = vmatpush.msra.mxu3 %v180_v59 }
  0x1e   :  { %93 = vmatpush.msra.mxu0 %v41_v30 }
  0x20   :  { %94 = vmatpush.msra.mxu0 %v40_v31 }
  0x21   :  { %95 = vmatmul.f32.vlgmr.msra.gmra.mxu0 %v34_v32 }
  0x22   :  { %228 = vmatmul.msk.f32.gmra.mxu1 %vm72_vm0, %v37_v33 }
  0x29   :  { %98 = vmatmul.f32.gmra.mxu0 %v36_v34 }
  0x97   :  { %v119_v44 = vpop.f32.mrf.mxu1 }
  0x9e   :  { %v96_v45 = vpop.f32.mrf.mxu0 }
  0x9f   :  { %v97_v46 = vadd.f32 %v233_v43, %v96_v45  ;;  %v122_v52 = vpop.f32.mrf.mxu1 }
  0xa1   :  { %v120_v48 = vadd.f32 %v119_v44, %v97_v46 }
  0xa3   :  { %v128_v49 = vmul.f32 %v127_v47, %v120_v48  ;;  %vm125_vm1 = vcmp.gt.f32.partialorder %v120_v48, 0.0 }
  0xa5   :  { %v130_v50 = vsel %vm125_vm1, %v120_v48, %v128_v49 }
  0xa6   :  { %v99_v51 = vpop.f32.mrf.mxu0  ;;  %229 = vmatmul.msk.f32.vlgmr.msra.gmra.mxu2 %vm143_vm2, %v130_v50 }
  0xa7   :  { %v100_v53 = vadd.f32 %v233_v43, %v99_v51 }
  0xa9   :  { %v123_v54 = vadd.f32 %v122_v52, %v100_v53 }
  0xab   :  { %v129_v55 = vmul.f32 %v127_v47, %v123_v54  ;;  %vm126_vm3 = vcmp.gt.f32.partialorder %v123_v54, 0.0 }
  0xad   :  { %v131_v56 = vsel %vm126_vm3, %v123_v54, %v129_v55 }
  0xae   :  { %230 = vmatmul.msk.f32.gmra.mxu2 %vm143_vm2, %v131_v56 }
 0x129   :  { %v167_v61 = vpop.f32.mrf.mxu2 }
 0x12a   :  { %v168_v63 = vadd.f32 %v234_v60, %v167_v61 }
 0x12c   :  { %v176_v0 = vmul.f32 %v175_v62, %v168_v63  ;;  %vm173_vm4 = vcmp.gt.f32.partialorder %v168_v63, 0.0 }
 0x12e   :  { %v178_v1 = vsel %vm173_vm4, %v168_v63, %v176_v0 }
 0x12f   :  { %231 = vmatmul.msk.f32.vlgmr.msra.gmra.mxu3 %vm143_vm2, %v178_v1 }
 0x131   :  { %v170_v2 = vpop.f32.mrf.mxu2 }
 0x132   :  { %v171_v3 = vadd.f32 %v234_v60, %v170_v2 }
 0x134   :  { %v177_v4 = vmul.f32 %v175_v62, %v171_v3  ;;  %vm174_vm5 = vcmp.gt.f32.partialorder %v171_v3, 0.0 }
 0x136   :  { %v179_v5 = vsel %vm174_vm5, %v171_v3, %v177_v4 }
 0x137   :  { %232 = vmatmul.msk.f32.gmra.mxu3 %vm143_vm2, %v179_v5 }
 0x1b2   :  { %v214_v7 = vpop.f32.mrf.mxu3 }
 0x1b3   :  { %v215_v8 = vadd.f32 %v235_v6, %v214_v7 }
 0x1b5   :  { %221 = vst.msk [vmem:[%s458_s9] sm:$0xff] %vm220_vm6, %v215_v8 }
 0x1ba   :  { %v217_v9 = vpop.f32.mrf.mxu3 }
 0x1bb   :  { %v218_v10 = vadd.f32 %v235_v6, %v217_v9 }
 0x1bd   :  { %222 = vst.msk [vmem:[%s458_s9 + $0x8] sm:$0xff] %vm220_vm6, %v218_v10 }

</bundles_post_ra>
